<compile_context>
chip_gen: v6e
topology: v6e:2x2x1
jax: 0.10.0
libtpu: 0.0.40
codegen_flags: <defaults>
</compile_context>

<pallas_src>
import functools

import jax
import jax.numpy as jnp
from jax.experimental import pallas as pl
from jax.experimental.pallas import tpu as pltpu


def _round_up(x, m):
    return ((x + m - 1) // m) * m


# --------------------------------------------------------------------------- #
# One-time parameter packing (hoisted out of the per-step path).              #
# --------------------------------------------------------------------------- #
def pack_decoder_cell_params(w_ih, w_hh, b_ih, b_hh, w_out, b_out,
                             mxu_dtype=jnp.bfloat16):
    """Pack nn.GRU + nn.Linear params into MXU-friendly fused slabs (done once).

    w_ih : (3H, I), w_hh : (3H, H), b_ih/b_hh : (3H,)   nn.GRU layouts (r,z,n)
    w_out: (V, H),  b_out: (V,)                         nn.Linear layout
    """
    f32 = jnp.float32
    H = w_hh.shape[1]
    I = w_ih.shape[1]
    V = w_out.shape[0]
    Hp = _round_up(H, 128)       # gate OUTPUT columns are 128-aligned
    Vp = _round_up(V, 128)       # vocab OUTPUT columns are 128-aligned

    wih3 = w_ih.astype(f32).reshape(3, H, I)   # (r, z, n) x (H, I)
    whh3 = w_hh.astype(f32).reshape(3, H, H)
    bi3 = b_ih.astype(f32).reshape(3, H)
    bh3 = b_hh.astype(f32).reshape(3, H)

    # Fused gate weight: rows [0:I) from W_ih, rows [I:I+H) from W_hh.
    # Gate g lives at columns [g*Hp, g*Hp + H): g=0 -> r, g=1 -> z, g=2 -> i_n
    # (input half only), g=3 -> h_n (hidden half only).
    w_big = jnp.zeros((I + H, 4 * Hp), f32)
    w_big = w_big.at[:I, 0 * Hp:0 * Hp + H].set(wih3[0].T)
    w_big = w_big.at[I:, 0 * Hp:0 * Hp + H].set(whh3[0].T)
    w_big = w_big.at[:I, 1 * Hp:1 * Hp + H].set(wih3[1].T)
    w_big = w_big.at[I:, 1 * Hp:1 * Hp + H].set(whh3[1].T)
    w_big = w_big.at[:I, 2 * Hp:2 * Hp + H].set(wih3[2].T)
    w_big = w_big.at[I:, 3 * Hp:3 * Hp + H].set(whh3[2].T)

    # Fused bias: r/z biases pre-summed; n-gate input/hidden biases kept separate.
    b_big = jnp.zeros((1, 4 * Hp), f32)
    b_big = b_big.at[0, 0 * Hp:0 * Hp + H].set(bi3[0] + bh3[0])
    b_big = b_big.at[0, 1 * Hp:1 * Hp + H].set(bi3[1] + bh3[1])
    b_big = b_big.at[0, 2 * Hp:2 * Hp + H].set(bi3[2])
    b_big = b_big.at[0, 3 * Hp:3 * Hp + H].set(bh3[2])

    # Output head: W_out^T (H, Vp).  The vocab-padding mask is baked into the
    # padded bias columns (-1e30; logits stay f32 in-kernel, so no overflow).
    wout_t = jnp.pad(w_out.astype(f32).T, ((0, 0), (0, Vp - V)))
    bout_p = jnp.full((1, Vp), -1e30, f32).at[0, :V].set(b_out.astype(f32))

    return dict(
        w_big=w_big.astype(mxu_dtype),
        b_big=b_big,
        w_out_t=wout_t.astype(mxu_dtype),
        b_out=bout_p,
        I=I, H=H, Hp=Hp, V=V, Vp=Vp,
    )


# --------------------------------------------------------------------------- #
# Kernel: one GRU step + output projection + log_softmax per grid iteration.  #
# Weights use constant index_maps -> DMAed once, VMEM-resident across steps.  #
# --------------------------------------------------------------------------- #
def _decoder_cell_kernel(x_ref, h0_ref, w_ref, b_ref, wout_ref, bout_ref,
                         logp_ref, hout_ref, h_scr, *, hp, h):
    t = pl.program_id(0)

    @pl.when(t == 0)
    def _():
        # (B, Hp) padded hidden; pad columns are zero on entry and stay zero.
        h_scr[...] = h0_ref[...]

    h_prev = h_scr[...]                               # (B, Hp) f32
    x = x_ref[0]                                      # (B, I)  f32

    # Single fused MXU pass: [x | h_valid] @ W_big  -> (B, 4*Hp) f32 accumulate.
    xh = jnp.concatenate([x, h_prev[:, :h]], axis=-1).astype(w_ref.dtype)
    g = jnp.dot(xh, w_ref[...], preferred_element_type=jnp.float32) + b_ref[...]

    # Gate columns are 128-aligned: r | z | i_n | h_n (PyTorch order r,z,n).
    r = jax.nn.sigmoid(g[:, 0 * hp:1 * hp])
    z = jax.nn.sigmoid(g[:, 1 * hp:2 * hp])
    n = jnp.tanh(g[:, 2 * hp:3 * hp] + r * g[:, 3 * hp:4 * hp])
    h_new = (1.0 - z) * n + z * h_prev                # pad cols: 0.5*0 + 0.5*0 = 0

    h_scr[...] = h_new
    hout_ref[...] = h_new[:, :h].astype(hout_ref.dtype)

    # Output projection + log_softmax (padded vocab cols already masked via bias).
    logits = jnp.dot(h_new[:, :h].astype(wout_ref.dtype), wout_ref[...],
                     preferred_element_type=jnp.float32) + bout_ref[...]
    m = jnp.max(logits, axis=-1, keepdims=True)
    lse = m + jnp.log(jnp.sum(jnp.exp(logits - m), axis=-1, keepdims=True))
    logp_ref[0] = (logits - lse).astype(logp_ref.dtype)


def _decoder_gru_steps(x_tbi, h0_bh, params):
    """Run T GRU decode steps with weights resident in VMEM across the grid."""
    T, B, I = x_tbi.shape
    H, Hp, V, Vp = params["H"], params["Hp"], params["V"], params["Vp"]
    f32 = jnp.float32

    h0_p = jnp.pad(h0_bh.astype(f32), ((0, 0), (0, Hp - H)))   # (B, Hp), pad cols 0

    kernel = functools.partial(_decoder_cell_kernel, hp=Hp, h=H)
    logp, h_last = pl.pallas_call(
        kernel,
        out_shape=(
            jax.ShapeDtypeStruct((T, B, Vp), f32),   # per-step log-probs
            jax.ShapeDtypeStruct((B, H), f32),       # final hidden (unpadded)
        ),
        grid_spec=pltpu.PrefetchScalarGridSpec(
            num_scalar_prefetch=0,
            grid=(T,),
            in_specs=[
                pl.BlockSpec((1, B, I), lambda t: (t, 0, 0)),        # x_t
                pl.BlockSpec((B, Hp), lambda t: (0, 0)),             # h0 (padded)
                pl.BlockSpec((I + H, 4 * Hp), lambda t: (0, 0)),     # fused W (bf16)
                pl.BlockSpec((1, 4 * Hp), lambda t: (0, 0)),         # fused bias
                pl.BlockSpec((H, Vp), lambda t: (0, 0)),             # W_out^T (bf16)
                pl.BlockSpec((1, Vp), lambda t: (0, 0)),             # b_out (+mask)
            ],
            out_specs=[
                pl.BlockSpec((1, B, Vp), lambda t: (t, 0, 0)),       # log-probs
                pl.BlockSpec((B, H), lambda t: (0, 0)),              # final hidden
            ],
            scratch_shapes=[pltpu.VMEM((B, Hp), f32)],               # hidden carry
        ),
        compiler_params=pltpu.CompilerParams(
            dimension_semantics=("arbitrary",),      # recurrence across time
        ),
    )(x_tbi.astype(f32), h0_p, params["w_big"], params["b_big"],
      params["w_out_t"], params["b_out"])

    if Vp != V:
        logp = logp[..., :V]
    return logp, h_last


def decoder_cell_forward(x_b1i, h0, params):
    """DecoderCell.forward (GRU config): single decode step, module semantics.

    x_b1i : (B, 1, I)   batch-first single-step input
    h0    : (1, B, H)   previous hidden state
    returns (log_probs (B, V), hidden (1, B, H))
    """
    B, T, I = x_b1i.shape
    assert T == 1, "DecoderCell decodes one token per call (output.squeeze(1))"
    x_tbi = jnp.transpose(x_b1i, (1, 0, 2))          # (1, B, I): no data movement
    logp, h_last = _decoder_gru_steps(x_tbi, h0[0], params)
    return logp[0], h_last[None]


def decoder_cell_forward_steps(x_bti, h0, params):
    """Teacher-forced multi-step decode: weights DMAed once for all T steps.

    x_bti : (B, T, I), h0 : (1, B, H)
    returns (log_probs (T, B, V), hidden (1, B, H))
    """
    x_tbi = jnp.transpose(x_bti, (1, 0, 2))
    logp, h_last = _decoder_gru_steps(x_tbi, h0[0], params)
    return logp, h_last[None]


# --------------------------------------------------------------------------- #
# Pure-JAX reference (PyTorch semantics) for correctness checking.            #
# --------------------------------------------------------------------------- #
def _decoder_cell_reference(x_b1i, h0, w_ih, w_hh, b_ih, b_hh, w_out, b_out):
    H = w_hh.shape[1]
    x = x_b1i[:, 0, :]
    h = h0[0]
    gi = x @ w_ih.T + b_ih
    gh = h @ w_hh.T + b_hh
    i_r, i_z, i_n = gi[:, :H], gi[:, H:2 * H], gi[:, 2 * H:]
    h_r, h_z, h_n = gh[:, :H], gh[:, H:2 * H], gh[:, 2 * H:]
    r = jax.nn.sigmoid(i_r + h_r)
    z = jax.nn.sigmoid(i_z + h_z)
    n = jnp.tanh(i_n + r * h_n)
    h_new = (1.0 - z) * n + z * h
    logits = h_new @ w_out.T + b_out
    return jax.nn.log_softmax(logits, axis=1), h_new[None]


if __name__ == "__main__":
    # Module config: input_size=32, hidden_size=32, output_size=256, GRU, nlayers=1.
    B, I, H, V = 8, 32, 32, 256
    key = jax.random.PRNGKey(0)
    ks = jax.random.split(key, 9)

    bound = 1.0 / jnp.sqrt(jnp.float32(H))   # PyTorch-style uniform init
    w_ih = jax.random.uniform(ks[0], (3 * H, I), jnp.float32, -bound, bound)
    w_hh = jax.random.uniform(ks[1], (3 * H, H), jnp.float32, -bound, bound)
    b_ih = jax.random.uniform(ks[2], (3 * H,), jnp.float32, -bound, bound)
    b_hh = jax.random.uniform(ks[3], (3 * H,), jnp.float32, -bound, bound)
    w_out = jax.random.uniform(ks[4], (V, H), jnp.float32, -bound, bound)
    b_out = jax.random.uniform(ks[5], (V,), jnp.float32, -bound, bound)

    # Pack weights ONCE (hoisted out of the per-step path).
    params = pack_decoder_cell_params(w_ih, w_hh, b_ih, b_hh, w_out, b_out)

    # --- single-step call (exact module semantics) ---
    x1 = jax.random.normal(ks[6], (B, 1, I), jnp.float32)
    h0 = jax.random.normal(ks[7], (1, B, H), jnp.float32)
    log_probs, h_n = decoder_cell_forward(x1, h0, params)
    log_probs = jax.block_until_ready(log_probs)
    h_n = jax.block_until_ready(h_n)

    ref_lp, ref_h = _decoder_cell_reference(x1, h0, w_ih, w_hh, b_ih, b_hh,
                                            w_out, b_out)
    assert log_probs.shape == (B, V) and h_n.shape == (1, B, H)
    # bf16 MXU operands (f32 accumulate / elementwise) -> relaxed tolerance.
    assert jnp.allclose(log_probs, ref_lp, atol=2e-2, rtol=2e-2), \
        float(jnp.max(jnp.abs(log_probs - ref_lp)))
    assert jnp.allclose(h_n, ref_h, atol=2e-2, rtol=2e-2), \
        float(jnp.max(jnp.abs(h_n - ref_h)))

    # --- multi-step decode (weights VMEM-resident across T steps) ---
    T = 4
    xT = jax.random.normal(ks[8], (B, T, I), jnp.float32)
    lp_T, h_T = decoder_cell_forward_steps(xT, h0, params)
    lp_T = jax.block_until_ready(lp_T)
    h_T = jax.block_until_ready(h_T)

    h_ref = h0
    for t in range(T):
        lp_ref_t, h_ref = _decoder_cell_reference(xT[:, t:t + 1, :], h_ref,
                                                  w_ih, w_hh, b_ih, b_hh,
                                                  w_out, b_out)
        assert jnp.allclose(lp_T[t], lp_ref_t, atol=2e-2, rtol=2e-2), \
            (t, float(jnp.max(jnp.abs(lp_T[t] - lp_ref_t))))
    assert jnp.allclose(h_T, h_ref, atol=2e-2, rtol=2e-2), \
        float(jnp.max(jnp.abs(h_T - h_ref)))

    # TODO(synk): LSTM / RNN_TANH / RNN_RELU config branches of DecoderCell are not
    # kernelized here (only the canonical GRU path); config.dropout is a no-op for
    # nlayers=1.
    print("KERNEL_OK")
</pallas_src>

<mosaic_0001>
module attributes {stable_mosaic.version = 11 : i64} {
  func.func @_decoder_cell_kernel(%arg0: i32, %arg1: memref<1x8x32xf32, #tpu.memory_space<vmem>>, %arg2: memref<8x128xf32, #tpu.memory_space<vmem>>, %arg3: memref<64x512xbf16, #tpu.memory_space<vmem>>, %arg4: memref<1x512xf32, #tpu.memory_space<vmem>>, %arg5: memref<32x256xbf16, #tpu.memory_space<vmem>>, %arg6: memref<1x256xf32, #tpu.memory_space<vmem>>, %arg7: memref<1x8x256xf32, #tpu.memory_space<vmem>>, %arg8: memref<8x32xf32, #tpu.memory_space<vmem>>, %arg9: memref<8x128xf32, #tpu.memory_space<vmem>>) attributes {dimension_semantics = [#tpu.dimension_semantics<arbitrary>], iteration_bounds = array<i64: 1>, scalar_prefetch = 0 : i64, scratch_operands = 1 : i64, tpu.core_type = #tpu.core_type<tc>, window_params = [{transform_indices = @transform_0, window_bounds = array<i64: 1, 8, 32>}, {pipeline_mode = #tpu.pipeline_mode<synchronous>, transform_indices = @transform_1, window_bounds = array<i64: 8, 128>}, {pipeline_mode = #tpu.pipeline_mode<synchronous>, transform_indices = @transform_2, window_bounds = array<i64: 64, 512>}, {pipeline_mode = #tpu.pipeline_mode<synchronous>, transform_indices = @transform_3, window_bounds = array<i64: 1, 512>}, {pipeline_mode = #tpu.pipeline_mode<synchronous>, transform_indices = @transform_4, window_bounds = array<i64: 32, 256>}, {pipeline_mode = #tpu.pipeline_mode<synchronous>, transform_indices = @transform_5, window_bounds = array<i64: 1, 256>}, {transform_indices = @transform_6, window_bounds = array<i64: 1, 8, 256>}, {pipeline_mode = #tpu.pipeline_mode<synchronous>, transform_indices = @transform_7, window_bounds = array<i64: 8, 32>}]} {
    %c0_i32 = arith.constant 0 : i32
    %0 = arith.cmpi eq, %arg0, %c0_i32 : i32
    %1 = arith.extui %0 : i1 to i32
    %c0_i32_0 = arith.constant 0 : i32
    %2 = arith.cmpi ne, %1, %c0_i32_0 : i32
    scf.if %2 {
      %c0_26 = arith.constant 0 : index
      %c0_27 = arith.constant 0 : index
      %60 = vector.load %arg2[%c0_26, %c0_27] : memref<8x128xf32, #tpu.memory_space<vmem>>, vector<8x128xf32>
      %c0_28 = arith.constant 0 : index
      %c0_29 = arith.constant 0 : index
      %61 = vector.load %arg9[%c0_28, %c0_29] : memref<8x128xf32, #tpu.memory_space<vmem>>, vector<8x128xf32>
      tpu.vector_store %arg9[%c0_28, %c0_29], %60 {strides = array<i32>} : memref<8x128xf32, #tpu.memory_space<vmem>>, vector<8x128xf32>,
    } else {
    }
    %c0 = arith.constant 0 : index
    %c0_1 = arith.constant 0 : index
    %3 = vector.load %arg9[%c0, %c0_1] : memref<8x128xf32, #tpu.memory_space<vmem>>, vector<8x128xf32>
    %c0_2 = arith.constant 0 : index
    %c0_3 = arith.constant 0 : index
    %c0_4 = arith.constant 0 : index
    %4 = vector.load %arg1[%c0_2, %c0_3, %c0_4] : memref<1x8x32xf32, #tpu.memory_space<vmem>>, vector<1x8x32xf32>
    %5 = vector.shape_cast %4 : vector<1x8x32xf32> to vector<8x32xf32>
    %6 = vector.extract_strided_slice %3 {offsets = [0, 0], sizes = [8, 32], strides = [1, 1]} : vector<8x128xf32> to vector<8x32xf32>
    %7 = tpu.concatenate %5, %6 in 1 : vector<8x32xf32>, vector<8x32xf32> -> vector<8x64xf32>
    %8 = arith.truncf %7 : vector<8x64xf32> to vector<8x64xbf16>
    %c0_5 = arith.constant 0 : index
    %c0_6 = arith.constant 0 : index
    %9 = vector.load %arg3[%c0_5, %c0_6] : memref<64x512xbf16, #tpu.memory_space<vmem>>, vector<64x512xbf16>
    %cst = arith.constant dense<0.000000e+00> : vector<8x512xf32>
    %10 = tpu.matmul %8, %9, %cst {dimension_numbers = #tpu.dot_dimension_numbers<[1], [0], [0], [1], [0, 0, 1, 1], [], []>} : vector<8x64xbf16>, vector<64x512xbf16>, vector<8x512xf32> -> vector<8x512xf32>
    %c0_7 = arith.constant 0 : index
    %c0_8 = arith.constant 0 : index
    %11 = vector.load %arg4[%c0_7, %c0_8] : memref<1x512xf32, #tpu.memory_space<vmem>>, vector<1x512xf32>
    %12 = vector.broadcast %11 : vector<1x512xf32> to vector<8x512xf32>
    %13 = arith.addf %10, %12 : vector<8x512xf32>
    %14 = vector.extract_strided_slice %13 {offsets = [0, 0], sizes = [8, 128], strides = [1, 1]} : vector<8x512xf32> to vector<8x128xf32>
    %15 = arith.negf %14 : vector<8x128xf32>
    %16 = math.exp %15 : vector<8x128xf32>
    %cst_9 = arith.constant 1.000000e+00 : f32
    %17 = vector.broadcast %cst_9 : f32 to vector<8x128xf32>
    %18 = arith.addf %17, %16 : vector<8x128xf32>
    %19 = arith.divf %17, %18 : vector<8x128xf32>
    %20 = vector.extract_strided_slice %13 {offsets = [0, 128], sizes = [8, 128], strides = [1, 1]} : vector<8x512xf32> to vector<8x128xf32>
    %21 = arith.negf %20 : vector<8x128xf32>
    %22 = math.exp %21 : vector<8x128xf32>
    %cst_10 = arith.constant 1.000000e+00 : f32
    %23 = vector.broadcast %cst_10 : f32 to vector<8x128xf32>
    %24 = arith.addf %23, %22 : vector<8x128xf32>
    %25 = arith.divf %23, %24 : vector<8x128xf32>
    %26 = vector.extract_strided_slice %13 {offsets = [0, 256], sizes = [8, 128], strides = [1, 1]} : vector<8x512xf32> to vector<8x128xf32>
    %27 = vector.extract_strided_slice %13 {offsets = [0, 384], sizes = [8, 128], strides = [1, 1]} : vector<8x512xf32> to vector<8x128xf32>
    %28 = arith.mulf %19, %27 : vector<8x128xf32>
    %29 = arith.addf %26, %28 : vector<8x128xf32>
    %30 = math.tanh %29 : vector<8x128xf32>
    %cst_11 = arith.constant 1.000000e+00 : f32
    %31 = vector.broadcast %cst_11 : f32 to vector<8x128xf32>
    %32 = arith.subf %31, %25 : vector<8x128xf32>
    %33 = arith.mulf %32, %30 : vector<8x128xf32>
    %34 = arith.mulf %25, %3 : vector<8x128xf32>
    %35 = arith.addf %33, %34 : vector<8x128xf32>
    %c0_12 = arith.constant 0 : index
    %c0_13 = arith.constant 0 : index
    %36 = vector.load %arg9[%c0_12, %c0_13] : memref<8x128xf32, #tpu.memory_space<vmem>>, vector<8x128xf32>
    tpu.vector_store %arg9[%c0_12, %c0_13], %35 {strides = array<i32>} : memref<8x128xf32, #tpu.memory_space<vmem>>, vector<8x128xf32>,
    %37 = vector.extract_strided_slice %35 {offsets = [0, 0], sizes = [8, 32], strides = [1, 1]} : vector<8x128xf32> to vector<8x32xf32>
    %c0_14 = arith.constant 0 : index
    %c0_15 = arith.constant 0 : index
    %38 = vector.load %arg8[%c0_14, %c0_15] : memref<8x32xf32, #tpu.memory_space<vmem>>, vector<8x32xf32>
    tpu.vector_store %arg8[%c0_14, %c0_15], %37 {strides = array<i32>} : memref<8x32xf32, #tpu.memory_space<vmem>>, vector<8x32xf32>,
    %39 = vector.extract_strided_slice %35 {offsets = [0, 0], sizes = [8, 32], strides = [1, 1]} : vector<8x128xf32> to vector<8x32xf32>
    %40 = arith.truncf %39 : vector<8x32xf32> to vector<8x32xbf16>
    %c0_16 = arith.constant 0 : index
    %c0_17 = arith.constant 0 : index
    %41 = vector.load %arg5[%c0_16, %c0_17] : memref<32x256xbf16, #tpu.memory_space<vmem>>, vector<32x256xbf16>
    %cst_18 = arith.constant dense<0.000000e+00> : vector<8x256xf32>
    %42 = tpu.matmul %40, %41, %cst_18 {dimension_numbers = #tpu.dot_dimension_numbers<[1], [0], [0], [1], [0, 0, 1, 1], [], []>} : vector<8x32xbf16>, vector<32x256xbf16>, vector<8x256xf32> -> vector<8x256xf32>
    %c0_19 = arith.constant 0 : index
    %c0_20 = arith.constant 0 : index
    %43 = vector.load %arg6[%c0_19, %c0_20] : memref<1x256xf32, #tpu.memory_space<vmem>>, vector<1x256xf32>
    %44 = vector.broadcast %43 : vector<1x256xf32> to vector<8x256xf32>
    %45 = arith.addf %42, %44 : vector<8x256xf32>
    %cst_21 = arith.constant dense<0xFF800000> : vector<8xf32>
    %46 = vector.multi_reduction <maximumf>, %45, %cst_21 [1] : vector<8x256xf32> to vector<8xf32>
    %47 = vector.shape_cast %46 : vector<8xf32> to vector<8x1xf32>
    %48 = vector.broadcast %47 : vector<8x1xf32> to vector<8x256xf32>
    %49 = arith.subf %45, %48 : vector<8x256xf32>
    %50 = math.exp %49 : vector<8x256xf32>
    %cst_22 = arith.constant dense<0.000000e+00> : vector<8xf32>
    %51 = vector.multi_reduction <add>, %50, %cst_22 [1] : vector<8x256xf32> to vector<8xf32>
    %52 = vector.shape_cast %51 : vector<8xf32> to vector<8x1xf32>
    %53 = math.log %52 : vector<8x1xf32>
    %54 = arith.addf %47, %53 : vector<8x1xf32>
    %55 = vector.broadcast %54 : vector<8x1xf32> to vector<8x256xf32>
    %56 = arith.subf %45, %55 : vector<8x256xf32>
    %c0_23 = arith.constant 0 : index
    %c0_24 = arith.constant 0 : index
    %c0_25 = arith.constant 0 : index
    %57 = vector.load %arg7[%c0_23, %c0_24, %c0_25] : memref<1x8x256xf32, #tpu.memory_space<vmem>>, vector<1x8x256xf32>
    %58 = vector.shape_cast %57 : vector<1x8x256xf32> to vector<8x256xf32>
    %59 = vector.shape_cast %56 : vector<8x256xf32> to vector<1x8x256xf32>
    tpu.vector_store %arg7[%c0_23, %c0_24, %c0_25], %59 {strides = array<i32>} : memref<1x8x256xf32, #tpu.memory_space<vmem>>, vector<1x8x256xf32>,
    return
  }
  func.func @transform_0(%arg0: i32) -> (i32, i32, i32) {
    %c0_i32 = arith.constant 0 : i32
    %c0_i32_0 = arith.constant 0 : i32
    %c0_i32_1 = arith.constant 0 : i32
    return %arg0, %c0_i32, %c0_i32_0 : i32, i32, i32
  }
  func.func @transform_1(%arg0: i32) -> (i32, i32) {
    %c0_i32 = arith.constant 0 : i32
    %c0_i32_0 = arith.constant 0 : i32
    %c0_i32_1 = arith.constant 0 : i32
    return %c0_i32, %c0_i32_0 : i32, i32
  }
  func.func @transform_2(%arg0: i32) -> (i32, i32) {
    %c0_i32 = arith.constant 0 : i32
    %c0_i32_0 = arith.constant 0 : i32
    %c0_i32_1 = arith.constant 0 : i32
    return %c0_i32, %c0_i32_0 : i32, i32
  }
  func.func @transform_3(%arg0: i32) -> (i32, i32) {
    %c0_i32 = arith.constant 0 : i32
    %c0_i32_0 = arith.constant 0 : i32
    %c0_i32_1 = arith.constant 0 : i32
    return %c0_i32, %c0_i32_0 : i32, i32
  }
  func.func @transform_4(%arg0: i32) -> (i32, i32) {
    %c0_i32 = arith.constant 0 : i32
    %c0_i32_0 = arith.constant 0 : i32
    %c0_i32_1 = arith.constant 0 : i32
    return %c0_i32, %c0_i32_0 : i32, i32
  }
  func.func @transform_5(%arg0: i32) -> (i32, i32) {
    %c0_i32 = arith.constant 0 : i32
    %c0_i32_0 = arith.constant 0 : i32
    %c0_i32_1 = arith.constant 0 : i32
    return %c0_i32, %c0_i32_0 : i32, i32
  }
  func.func @transform_6(%arg0: i32) -> (i32, i32, i32) {
    %c0_i32 = arith.constant 0 : i32
    %c0_i32_0 = arith.constant 0 : i32
    %c0_i32_1 = arith.constant 0 : i32
    return %arg0, %c0_i32, %c0_i32_0 : i32, i32, i32
  }
  func.func @transform_7(%arg0: i32) -> (i32, i32) {
    %c0_i32 = arith.constant 0 : i32
    %c0_i32_0 = arith.constant 0 : i32
    %c0_i32_1 = arith.constant 0 : i32
    return %c0_i32, %c0_i32_0 : i32, i32
  }
}

</mosaic_0001>

<bundles_post_ra>
// kernel: tpu_custom_call.1
= control target key start
LH: loop header
LB: loop body
LE: loop exit
PB: predicated region body
PF: predicated region fallthrough
CT: control target
= control target key end

     0   :  { %13 = vsyncpa [#allocation4], 0  ;;  %s746_s0 = inlined_call_operand.hbm [shape: f32[1,8,32], index: 0, kind: input, shape index: {}]   ;;  %s747_s1 = inlined_call_operand.hbm [shape: f32[8,128], index: 1, kind: input, shape index: {}]   ;;  %s748_s2 = inlined_call_operand.hbm [shape: bf16[64,512], index: 2, kind: input, shape index: {}]   ;;  %s749_s3 = inlined_call_operand.vmem [shape: f32[1,512], index: 3, kind: input, shape index: {}]   ;;  %s750_s4 = inlined_call_operand.hbm [shape: bf16[32,256], index: 4, kind: input, shape index: {}]   ;;  %s751_s5 = inlined_call_operand.vmem [shape: f32[1,256], index: 5, kind: input, shape index: {}]   ;;  %s752_s6 = inlined_call_operand.hbm [shape: f32[1,8,256], index: 6, kind: output, shape index: {0}]   ;;  %s753_s7 = inlined_call_operand.hbm [shape: f32[8,32], index: 7, kind: output, shape index: {1}]  }
   0x1   :  { %14 = vsyncpa [#allocation7], 0 }
   0x2   :  { %15 = vsyncpa [#allocation10], 0 }
   0x3   :  { %16 = vsyncpa [#allocation5], 0 }
   0x4   :  { %17 = vsyncpa [#allocation13], 0  ;;  %s663_s24 = smov [#allocation6]   ;;  %s664_s26 = smov [#allocation3]  }
   0x5   :  { %s34_s25 = sshll.u32 %s663_s24, 4  ;;  %s24_s27 = sshll.u32 %s664_s26, 4  ;;  %s35_s25 = int_to_ptr.vmem [resolvable:$true] %s34_s25  ;;  %s25_s27 = int_to_ptr.vmem [resolvable:$true] %s24_s27 }
   0x6   :  { %s541_s28 = scalar_lea.vmem %s35_s25, 128  ;;  %p546_p1 = scmp.lt.s32.totalorder %s35_s25, %s35_s25 }
   0x7   :  { %p542_p0 = scmp.ne.s32.totalorder %s35_s25, %s541_s28  ;;  %p547_p2 = scmp.lt.s32.totalorder %s541_s28, %s541_s28 }
   0x9   :  { %p548_p3 = por %p547_p2, %p546_p1 }
   0xb   :  { %p549_p4 = pnand %p548_p3, %p542_p0 }
   0xd   :  { %552 = shalt.err (!%p549_p4)
}
   0xe   :  { %37 = dma.hbm_to_vmem [thread:$0]  %s747_s1, 128, %s35_s25, [#allocation7]  }
   0xf   :  { %s561_s8 = scalar_lea.vmem %s25_s27, 128  ;;  %p566_p6 = scmp.lt.s32.totalorder %s25_s27, %s25_s27 }
  0x10   :  { %p562_p5 = scmp.ne.s32.totalorder %s25_s27, %s561_s8  ;;  %p567_p7 = scmp.lt.s32.totalorder %s561_s8, %s561_s8 }
  0x12   :  { %p568_p8 = por %p567_p7, %p566_p6 }
  0x14   :  { %p569_p9 = pnand %p568_p8, %p562_p5 }
  0x16   :  { %572 = shalt.err (!%p569_p9)
}
  0x17   :  { %27 = dma.hbm_to_vmem [thread:$0]  %s746_s0, 128, %s25_s27, [#allocation4]  }
  0x18   :  { %s665_s11 = smov [#allocation8]  }
  0x19   :  { %s43_s12 = sshll.u32 %s665_s11, 4  ;;  %s44_s12 = int_to_ptr.vmem [resolvable:$true] %s43_s12 }
  0x1a   :  { %s581_s13 = scalar_lea.vmem %s44_s12, 2048  ;;  %p586_p11 = scmp.lt.s32.totalorder %s44_s12, %s44_s12 }
  0x1b   :  { %p582_p10 = scmp.ne.s32.totalorder %s44_s12, %s581_s13  ;;  %p587_p12 = scmp.lt.s32.totalorder %s581_s13, %s581_s13 }
  0x1d   :  { %p588_p13 = por %p587_p12, %p586_p11 }
  0x1f   :  { %p589_p0 = pnand %p588_p13, %p582_p10 }
  0x21   :  { %592 = shalt.err (!%p589_p0)
}
  0x22   :  { %s666_s1 = smov 256   ;;  %s667_s14 = smov 16  }
  0x23   :  { %49 = dma.hbm_to_vmem [thread:$0]  %s748_s2, 2048, %s44_s12, [#allocation7], %s666_s1, %s666_s1, %s667_s14  }
  0x24   :  { %s668_s17 = smov [#allocation9]  }
  0x25   :  { %s57_s18 = sshll.u32 %s668_s17, 4  ;;  %s58_s18 = int_to_ptr.vmem [resolvable:$true] %s57_s18 }
  0x26   :  { %s601_s0 = scalar_lea.vmem %s58_s18, 512  ;;  %p606_p2 = scmp.lt.s32.totalorder %s58_s18, %s58_s18 }
  0x27   :  { %p602_p1 = scmp.ne.s32.totalorder %s58_s18, %s601_s0  ;;  %p607_p3 = scmp.lt.s32.totalorder %s601_s0, %s601_s0 }
  0x29   :  { %p608_p4 = por %p607_p3, %p606_p2 }
  0x2b   :  { %p609_p5 = pnand %p608_p4, %p602_p1 }
  0x2d   :  { %612 = shalt.err (!%p609_p5)
}
  0x2e   :  { %s669_s19 = smov 128   ;;  %s670_s20 = smov 8  }
  0x2f   :  { %63 = dma.hbm_to_vmem [thread:$0]  %s750_s4, 512, %s58_s18, [#allocation10], %s669_s19, %s669_s19, %s670_s20  }
  0x30   :  { %653 = dma.done.wait [#allocation4], 128  }
  0x31   :  { %654 = vsyncadd [#allocation4], 4294967168 }
  0x32   :  { %655 = dma.done.wait [#allocation7], 2176  }
  0x33   :  { %656 = vsyncadd [#allocation7], 4294965120 }
  0x34   :  { %657 = dma.done.wait [#allocation10], 512  }
  0x35   :  { %658 = vsyncadd [#allocation10], 4294966784  ;;  %v671_v0 = vmov 0   ;;  %v727_v1 = vld [vmem:[#allocation6] sm:$0xff]  ;;  %s672_s2 = smov 32   ;;  %v86_v18 = vld [vmem:[#allocation3] sm:$0xff]  ;;  %v112_v26 = vlaneseq }
  0x36   :  { %248 = vmatprep.mubr.bf16.mxu0 %v671_v0  ;;  %289 = vmatprep.mubr.bf16.mxu1 %v671_v0  ;;  %v487_v2 = vld [vmem:[#allocation8 + $0x64] ss:$16 sps:$4 sm:$0xff]   ;;  %v489_v3 = vld [vmem:[#allocation8 + $0x6c] ss:$16 sps:$4 sm:$0xff]   ;;  %v491_v4 = vld [vmem:[#allocation8 + $0x60] ss:$16 sps:$4 sm:$0xff]  }
  0x37   :  { %88 = vrot.lane.b32.xlu0 %v727_v1, %s672_s2  ;;  %v492_v5 = vld [vmem:[#allocation8 + $0x68] ss:$16 sps:$4 sm:$0xff]   ;;  %224 = vmatprep.subr.bf16.mxu0 %v487_v2  ;;  %v493_v6 = vld [vmem:[#allocation8 + $0x44] ss:$16 sps:$4 sm:$0xff]   ;;  %v495_v7 = vld [vmem:[#allocation8 + $0x4c] ss:$16 sps:$4 sm:$0xff]  }
  0x38   :  { %265 = vmatprep.subr.bf16.mxu1 %v489_v3  ;;  %225 = vmatpush1.bf16.msra.mxu0 %v491_v4  ;;  %v497_v8 = vld [vmem:[#allocation8 + $0x40] ss:$16 sps:$4 sm:$0xff]   ;;  %v498_v9 = vld [vmem:[#allocation8 + $0x48] ss:$16 sps:$4 sm:$0xff]   ;;  %v499_v10 = vld [vmem:[#allocation8 + $0x24] ss:$16 sps:$4 sm:$0xff]  }
  0x39   :  { %266 = vmatpush1.bf16.msra.mxu1 %v492_v5  ;;  %226 = vmatprep.subr.bf16.mxu0 %v493_v6  ;;  %v501_v11 = vld [vmem:[#allocation8 + $0x2c] ss:$16 sps:$4 sm:$0xff]   ;;  %v503_v12 = vld [vmem:[#allocation8 + $0x20] ss:$16 sps:$4 sm:$0xff]   ;;  %v504_v13 = vld [vmem:[#allocation8 + $0x28] ss:$16 sps:$4 sm:$0xff]  }
  0x3a   :  { %267 = vmatprep.subr.bf16.mxu1 %v495_v7  ;;  %v505_v14 = vld [vmem:[#allocation8 + $0x4] ss:$16 sps:$4 sm:$0xff]   ;;  %v507_v15 = vld [vmem:[#allocation8 + $0xc] ss:$16 sps:$4 sm:$0xff]   ;;  %v509_v16 = vld [vmem:[#allocation8] ss:$16 sps:$4 sm:$0xff]  }
  0x3b   :  { %v510_v17 = vld [vmem:[#allocation8 + $0x8] ss:$16 sps:$4 sm:$0xff]   ;;  %vm91_vm0 = vcmask 261120   ;;  %vm212_vm1 = vcmask 523264   ;;  %v513_v23 = vld [vmem:[#allocation9 + $0x14] ss:$8 sps:$4 sm:$0xff]  }
  0x3c   :  { %227 = vmatpush1.bf16.msra.mxu0 %v497_v8  ;;  %v511_v22 = vld [vmem:[#allocation9 + $0x10] ss:$8 sps:$4 sm:$0xff]   ;;  %v516_v24 = vld [vmem:[#allocation9 + $0x4] ss:$8 sps:$4 sm:$0xff]   ;;  %v514_v25 = vld [vmem:[#allocation9] ss:$8 sps:$4 sm:$0xff]  }
  0x3d   :  { %268 = vmatpush1.bf16.msra.mxu1 %v498_v9  ;;  %228 = vmatprep.subr.bf16.mxu0 %v499_v10  ;;  %v113_v27 = vshrl.u32 %v112_v26, 7  ;;  %v110_v29 = vld [vmem:[%s749_s3] sm:$0xf] }
  0x3e   :  { %269 = vmatprep.subr.bf16.mxu1 %v501_v11  ;;  %v324_v2 = vld [vmem:[%s751_s5] sm:$0x3]  ;;  %s673_s5 = smov [#allocation12]  }
  0x3f   :  { %v114_v28 = vsub.s32 0, %v113_v27  ;;  %v118_v31 = vsub.s32 1, %v113_v27  ;;  %v126_v47 = vsub.s32 3, %v113_v27  ;;  %v122_v48 = vsub.s32 2, %v113_v27  ;;  %s435_s25 = sshll.u32 %s673_s5, 4  ;;  %s436_s25 = int_to_ptr.vmem [resolvable:$true] %s435_s25 }
  0x40   :  { %229 = vmatpush1.bf16.msra.mxu0 %v503_v12  ;;  %s613_s26 = scalar_lea.vmem %s436_s25, 128  ;;  %p618_p7 = scmp.lt.s32.totalorder %s436_s25, %s436_s25 }
  0x41   :  { %270 = vmatpush1.bf16.msra.mxu1 %v504_v13  ;;  %230 = vmatprep.subr.bf16.mxu0 %v505_v14  ;;  %v115_v30 = vrot.slane %v110_v29, %v114_v28  ;;  %v119_v38 = vrot.slane %v110_v29, %v118_v31  ;;  %v127_v50 = vrot.slane %v110_v29, %v126_v47  ;;  %p614_p6 = scmp.ne.s32.totalorder %s436_s25, %s613_s26  ;;  %p619_p8 = scmp.lt.s32.totalorder %s613_s26, %s613_s26 }
  0x42   :  { %271 = vmatprep.subr.bf16.mxu1 %v507_v15  ;;  %v123_v51 = vrot.slane %v110_v29, %v122_v48  ;;  %v329_v3 = vrot.slane %v324_v2, %v114_v28  ;;  %v333_v4 = vrot.slane %v324_v2, %v118_v31 }
  0x43   :  { %p620_p9 = por %p619_p8, %p618_p7 }
  0x44   :  { %231 = vmatpush1.bf16.msra.mxu0 %v509_v16 }
  0x45   :  { %272 = vmatpush1.bf16.msra.mxu1 %v510_v17  ;;  %371 = vmatprep.subr.bf16.mxu0 %v513_v23  ;;  %p621_p10 = pnand %p620_p9, %p614_p6 }
  0xa9   :  { %v89_v19 = vpop.permute.xlu0 %88 }
  0xaa   :  { %v92_v20 = vsel %vm91_vm0, %v86_v18, %v89_v19 }
  0xab   :  { %v93_v21 = vpack.c.bf16 %v92_v20, %v92_v20 }
  0xad   :  { %466 = vmatmul.mubr.msk.bf16.vlgmr.msra.gmra.mxu0 %vm212_vm1, %v93_v21  ;;  %467 = vmatmul.mubr.msk.bf16.vlgmr.msra.gmra.mxu1 %vm212_vm1, %v93_v21 }
  0xae   :  { %391 = vmatprep.mubr.bf16.mxu0 %v671_v0  ;;  %372 = vmatpush1.bf16.msra.mxu0 %v511_v22 }
  0xaf   :  { %373 = vmatprep.subr.bf16.mxu0 %v516_v24 }
  0xb2   :  { %374 = vmatpush1.bf16.msra.mxu0 %v514_v25 }
 0x16d   :  { %v250_v32 = vpop.f32.mrf.mxu0  ;;  %v291_v33 = vpop.f32.mrf.mxu1 }
 0x16e   :  { %v251_v34 = vadd.f32 %v250_v32, %v115_v30  ;;  %v292_v55 = vadd.f32 %v291_v33, %v123_v51 }
 0x16f   :  { %v252_v35 = vpop.f32.mrf.mxu0  ;;  %v293_v36 = vpop.f32.mrf.mxu1 }
 0x170   :  { %v468_v37 = vmul.f32 -1.442695, %v251_v34  ;;  %v253_v43 = vadd.f32 %v252_v35, %v119_v38  ;;  %v294_v53 = vadd.f32 %v293_v36, %v127_v50 }
 0x171   :  { %v254_v39 = vpop.f32.mrf.mxu0  ;;  %v295_v40 = vpop.f32.mrf.mxu1 }
 0x172   :  { %517 = vpow2.f32 %v468_v37  ;;  %v469_v44 = vmul.f32 -1.442695, %v253_v43 }
 0x173   :  { %v255_v41 = vpop.f32.mrf.mxu0  ;;  %v296_v42 = vpop.f32.mrf.mxu1 }
 0x174   :  { %519 = vpow2.f32 %v469_v44 }
 0x17f   :  { %v518_v45 = vpop.eup %517 }
 0x180   :  { %v301_v46 = vadd.f32 1.0, %v518_v45 }
 0x181   :  { %v520_v49 = vpop.eup %519 }
 0x182   :  { %521 = vrcp.f32 %v301_v46  ;;  %v307_v52 = vadd.f32 1.0, %v520_v49 }
 0x184   :  { %523 = vrcp.f32 %v307_v52 }
 0x18f   :  { %v522_v54 = vpop.eup %521 }
 0x190   :  { %v310_v56 = vmul.f32 %v522_v54, %v294_v53 }
 0x191   :  { %v524_v58 = vpop.eup %523 }
 0x192   :  { %v311_v57 = vadd.f32 %v310_v56, %v292_v55  ;;  %v313_v59 = vsub.f32 1.0, %v524_v58  ;;  %v315_v62 = vmul.f32 %v524_v58, %v727_v1 }
 0x194   :  { %525 = vtanh.f32 %v311_v57 }
 0x1a1   :  { %v526_v60 = vpop.eup %525 }
 0x1a2   :  { %v314_v61 = vmul.f32 %v526_v60, %v313_v59 }
 0x1a4   :  { %v316_v63 = vadd.f32 %v315_v62, %v314_v61 }
 0x1a6   :  { %v319_v0 = vpack.c.bf16 %v316_v63, %v316_v63  ;;  %318 = vst.msk [vmem:[#allocation12] sm:$0xff] %vm91_vm0, %v316_v63 }
 0x1a8   :  { %474 = vmatmul.mubr.msk.bf16.vlgmr.msra.gmra.mxu0 %vm91_vm0, %v319_v0 }
 0x268   :  { %v393_v5 = vpop.f32.mrf.mxu0 }
 0x269   :  { %v394_v7 = vadd.f32 %v393_v5, %v329_v3 }
 0x26a   :  { %v395_v6 = vpop.f32.mrf.mxu0 }
 0x26b   :  { %v396_v8 = vadd.f32 %v395_v6, %v333_v4 }
 0x26c   :  { %v397_v9 = vpop.f32.mrf.mxu0 }
 0x26d   :  { %v400_v10 = vmax.f32 %v394_v7, %v396_v8 }
 0x26e   :  { %v398_v11 = vpop.f32.mrf.mxu0 }
 0x26f   :  { %401 = vmax.xlane.f32.xlu0 %v400_v10 }
 0x2f8   :  { %v402_v1 = vpop.xlane.xlu0 %401 }
 0x2f9   :  { %v403_v12 = vsub.f32 %v394_v7, %v402_v1  ;;  %v404_v13 = vsub.f32 %v396_v8, %v402_v1 }
 0x2fb   :  { %v405_v14 = vmul.f32 1.442695, %v403_v12  ;;  %v407_v15 = vmul.f32 1.442695, %v404_v13 }
 0x2fd   :  { %527 = vpow2.f32 %v405_v14 }
 0x2fe   :  { %529 = vpow2.f32 %v407_v15 }
 0x30a   :  { %v528_v16 = vpop.eup %527 }
 0x30b   :  { %v530_v17 = vpop.eup %529 }
 0x30c   :  { %v409_v18 = vadd.f32 %v530_v17, %v528_v16 }
 0x30e   :  { %410 = vadd.xlane.f32.xlu1 %v409_v18 }
 0x30f   :  { %624 = shalt.err (!%p621_p10)
}
 0x310   :  { %438 = dma.vmem_to_hbm [thread:$0]  %s436_s25, 128, %s753_s7, [#allocation13]  }
 0x311   :  { %s674_s29 = smov [#allocation11]  }
 0x312   :  { %s425_s30 = sshll.u32 %s674_s29, 4  ;;  %s426_s30 = int_to_ptr.vmem [resolvable:$true] %s425_s30 }
 0x313   :  { %s633_s8 = scalar_lea.vmem %s426_s30, 256  ;;  %p638_p12 = scmp.lt.s32.totalorder %s426_s30, %s426_s30 }
 0x314   :  { %p634_p11 = scmp.ne.s32.totalorder %s426_s30, %s633_s8  ;;  %p639_p13 = scmp.lt.s32.totalorder %s633_s8, %s633_s8 }
 0x316   :  { %p640_p0 = por %p639_p13, %p638_p12 }
 0x318   :  { %p641_p1 = pnand %p640_p0, %p634_p11 }
 0x397   :  { %v411_v19 = vpop.xlane.xlu1 %410 }
 0x398   :  { %531 = vlog2.f32 %v411_v19 }
 0x3a5   :  { %v532_v20 = vpop.eup %531 }
 0x3a6   :  { %v413_v21 = vmul.f32 0.6931472, %v532_v20 }
 0x3a8   :  { %v414_v22 = vadd.f32 %v413_v21, %v402_v1 }
 0x3aa   :  { %v415_v23 = vsub.f32 %v394_v7, %v414_v22  ;;  %v416_v24 = vsub.f32 %v396_v8, %v414_v22 }
 0x3ac   :  { %417 = vst [vmem:[#allocation11] sm:$0xff] %v415_v23  ;;  %418 = vst [vmem:[#allocation11 + $0x8] sm:$0xff] %v416_v24 }
 0x3ad   :  { %644 = shalt.err (!%p641_p1)
}
 0x3ae   :  { %428 = dma.vmem_to_hbm [thread:$0]  %s426_s30, 256, %s752_s6, [#allocation5]  }
 0x3af   :  { %659 = dma.done.wait [#allocation5], 256  }
 0x3b0   :  { %660 = vsyncadd [#allocation5], 4294967040 }
 0x3b1   :  { %661 = dma.done.wait [#allocation13], 128  }
 0x3b2   :  { %662 = vsyncadd [#allocation13], 4294967168 }
 0x3b3   :  { %445 = vsyncpa [#allocation4], 1 }
 0x3b4   :  { %446 = vsyncpa [#allocation7], 1 }
 0x3b5   :  { %447 = vsyncpa [#allocation10], 1 }
 0x3b6   :  { %448 = vsyncpa [#allocation5], 1 }
 0x3b7   :  { %449 = vsyncpa [#allocation13], 1 }

</bundles_post_ra>
